<compile_context>
chip_gen: v7x
topology: tpu7x:2x2x1
jax: 0.10.0
libtpu: 0.0.40
codegen_flags: <defaults>
</compile_context>

<pallas_src>
import jax
import jax.numpy as jnp
from jax.experimental import pallas as pl
from jax.experimental.pallas import tpu as pltpu

_VMEM_LIMIT = 32 * 1024 * 1024  # explicit: > v5e's 16 MiB default scoped, < v7x's 64 MiB physical


def _decode_step_kernel(
    comb_ref,    # (B, ES)      f32   combined text+style embedding
    enc_ref,     # (L, B*H)     bf16  encoder outputs, time-major, (batch,hidden) flat on lanes
    len_ref,     # (B, 1)       int32 valid lengths
    h0_ref,      # (nL, B, H)   f32   previous GRU hidden (HBM buffer aliased with hout)
    wa_emb_ref,  # (ES, L)      bf16  attn linear, embedding part
    wa_hid_ref,  # (H, L)       bf16  attn linear, hidden part
    ba_ref,      # (1, L)       f32
    wc_emb_ref,  # (ES, H)      bf16  attn_combine, embedding part
    wc_att_ref,  # (H, H)       bf16  attn_combine, attention part
    bc_ref,      # (1, H)       f32
    wih_ref,     # (nL, H, 3H)  bf16  GRU input weights, gates packed on lanes [r|z|n]
    bih_ref,     # (nL, 1, 3H)  f32
    whh_ref,     # (nL, H, 3H)  bf16  GRU hidden weights, gates packed on lanes [r|z|n]
    bhh_ref,     # (nL, 1, 3H)  f32
    hout_ref,    # (nL, B, H)   f32   out: new GRU hidden (aliased with h0)
    xlast_ref,   # (B, H)       f32   out: last-layer hidden, fed straight to vocab projection
):
    comb = comb_ref[...]
    n_layers, _, H = h0_ref.shape
    B = comb.shape[0]
    L = ba_ref.shape[1]

    lasth = h0_ref[n_layers - 1]                               # (B, H)

    # attn linear on concat([emb, last_hidden]) as a split matmul (no lane concat)
    comb_b = comb.astype(jnp.bfloat16)
    scores = (jnp.dot(comb_b, wa_emb_ref[...], preferred_element_type=jnp.float32)
              + jnp.dot(lasth.astype(jnp.bfloat16), wa_hid_ref[...],
                        preferred_element_type=jnp.float32)
              + ba_ref[...])                                   # (B, L) f32

    # length mask: positions >= length get a large finite negative (matches -inf masking
    # for any row with >=1 valid position, and never produces NaN for empty rows)
    idx = jax.lax.broadcasted_iota(jnp.int32, (B, L), 1)
    scores = jnp.where(idx < len_ref[...], scores, -1e30)

    # softmax over the sequence axis (f32, exact normalisation; cost is negligible here)
    m = jnp.max(scores, axis=1, keepdims=True)
    e = jnp.exp(scores - m)
    s = jnp.sum(e, axis=1, keepdims=True)
    attn_w = e / s                                             # (B, L)

    # attn_applied = bmm(attn_w, enc) on the MXU: one (B,L)@(L,B*H) matmul against the
    # flattened time-major encoder tile, then a cheap block-diagonal select (B_pad rows).
    # TODO(synk): for very long encoder sequences (L*B*H approaching VMEM, esp. v7x 64 MiB),
    # tile over L with a grid axis + online softmax instead of keeping enc fully resident.
    full = jnp.dot(attn_w.astype(jnp.bfloat16), enc_ref[...],
                   preferred_element_type=jnp.float32)         # (B, B*H) f32
    row_id = jax.lax.broadcasted_iota(jnp.int32, (B, H), 0)
    attn_applied = jnp.zeros((B, H), jnp.float32)
    for bp in range(B):
        attn_applied = attn_applied + jnp.where(
            row_id == bp, full[:, bp * H:(bp + 1) * H], 0.0)   # (B, H)

    # attn_combine on concat([emb, attn_applied]) + ReLU (split matmul == concat matmul)
    x = (jnp.dot(comb_b, wc_emb_ref[...], preferred_element_type=jnp.float32)
         + jnp.dot(attn_applied.astype(jnp.bfloat16), wc_att_ref[...],
                   preferred_element_type=jnp.float32)
         + bc_ref[...])
    x = jnp.maximum(x, 0.0)                                    # (B, H)

    # single-time-step multi-layer GRU, PyTorch gate order (r, z, n); gates packed on the
    # lane axis -> 2 MXU dots per layer instead of 6 tiny latency-bound ones.
    # TODO(synk): cfg.gru_dropout between layers is a train-time op; eval semantics here.
    for layer in range(n_layers):
        h_prev = h0_ref[layer]                                 # (B, H)
        gi = jnp.dot(x.astype(jnp.bfloat16), wih_ref[layer],
                     preferred_element_type=jnp.float32) + bih_ref[layer]   # (B, 3H)
        gh = jnp.dot(h_prev.astype(jnp.bfloat16), whh_ref[layer],
                     preferred_element_type=jnp.float32) + bhh_ref[layer]   # (B, 3H)
        r = jax.nn.sigmoid(gi[:, 0:H] + gh[:, 0:H])
        z = jax.nn.sigmoid(gi[:, H:2 * H] + gh[:, H:2 * H])
        n = jnp.tanh(gi[:, 2 * H:3 * H] + r * gh[:, 2 * H:3 * H])
        h_new = (1.0 - z) * n + z * h_prev
        hout_ref[layer] = h_new        # per-layer store: bounds live ranges, no final stack
        x = h_new

    xlast_ref[...] = x                 # last-layer hidden, consumed directly by kernel 2


def _vocab_projection_kernel(x_ref, wo_ref, bo_ref, logits_ref):
    # (B, H) @ (H, TV) tile of the output projection; bf16 weights, f32 accumulate.
    # TODO(synk): fp8 (v7x) / int8 (v5e, v6e) wo quantisation would halve the dominant
    # HBM stream; needs accuracy validation, so bf16 is kept here.
    logits_ref[...] = (jnp.dot(x_ref[...].astype(jnp.bfloat16), wo_ref[...],
                               preferred_element_type=jnp.float32)
                       + bo_ref[...])


def _vocab_tile(v_pad, h, *, max_tile=8192, weight_bytes_budget=8 << 20):
    """Largest vocab tile that is a multiple of 128, divides the padded vocab, keeps a
    multi-step grid (preferring an even step count so both v7x TensorCores stay balanced
    under dimension_semantics=('parallel',)), and whose double-buffered bf16 weight tile
    stays within the VMEM budget."""
    best_even, best_any = None, None
    tv = 128
    while tv <= min(v_pad // 2, max_tile):
        if v_pad % tv == 0 and 2 * h * tv * 2 <= weight_bytes_budget:
            best_any = tv
            if (v_pad // tv) % 2 == 0:
                best_even = tv
        tv += 128
    if best_even is not None:
        return best_even
    if best_any is not None:
        return best_any
    return v_pad   # degenerate small vocab: single block


def attention_decoder_forward(input_sequences, hidden, sequences_lengths,
                              sequences_styles, encoder_outputs, params):
    """Embedding gather + batch/vocab padding (glue) and the two Pallas kernels."""
    B = input_sequences.shape[1]
    nL, _, H = hidden.shape
    L = encoder_outputs.shape[0]
    V = params["wo"].shape[1]

    # embedding lookups (glue)
    text_emb = params["text_emb"][input_sequences]             # (1, B, E)
    style_emb = params["style_emb"][sequences_styles]          # (1, B, S)
    comb = jnp.concatenate([text_emb, style_emb], axis=2)[0]   # (B, E+S) f32
    lengths = sequences_lengths.astype(jnp.int32).reshape(B, 1)

    # pad batch to >= 8 sublanes (free MXU row fill); padded rows get length 1
    B_pad = max(8, -(-B // 8) * 8)
    pad = B_pad - B
    if pad:
        comb = jnp.pad(comb, ((0, pad), (0, 0)))
        hidden_p = jnp.pad(hidden, ((0, 0), (0, pad), (0, 0)))
        enc_p = jnp.pad(encoder_outputs, ((0, 0), (0, pad), (0, 0)))
        lengths = jnp.pad(lengths, ((0, pad), (0, 0)), constant_values=1)
    else:
        hidden_p, enc_p = hidden, encoder_outputs

    # encoder operand: bf16 (halves the only O(L*B*H) HBM read / VMEM residency) and
    # flattened (batch, hidden) on lanes — a free contiguous reshape in the wrapper.
    enc2d = enc_p.astype(jnp.bfloat16).reshape(L, B_pad * H)

    vmem = pl.BlockSpec(memory_space=pltpu.MemorySpace.VMEM)
    new_hidden_p, x_last = pl.pallas_call(
        _decode_step_kernel,
        out_shape=(jax.ShapeDtypeStruct((nL, B_pad, H), jnp.float32),
                   jax.ShapeDtypeStruct((B_pad, H), jnp.float32)),
        in_specs=[vmem] * 14,
        out_specs=(vmem, vmem),
        input_output_aliases={3: 0},   # reuse the previous-hidden HBM buffer for the new hidden
        compiler_params=pltpu.CompilerParams(vmem_limit_bytes=_VMEM_LIMIT),
    )(comb, enc2d, lengths, hidden_p,
      params["wa_emb"], params["wa_hid"], params["ba"],
      params["wc_emb"], params["wc_att"], params["bc"],
      params["wih"], params["bih"], params["whh"], params["bhh"])

    # vocab projection tiled over V (padded to a multiple of 128): lane-dense stores,
    # pipelined weight DMA, parallel grid axis for the v7x megacore split.
    V_pad = -(-V // 128) * 128
    wo, bo = params["wo"], params["bo"]
    if V_pad != V:
        wo = jnp.pad(wo, ((0, 0), (0, V_pad - V)))
        bo = jnp.pad(bo, ((0, 0), (0, V_pad - V)))
    TV = _vocab_tile(V_pad, H)
    # TODO(synk): on v7x with very large V, add pipeline_mode=pl.Buffered(3) on the wo spec.
    logits = pl.pallas_call(
        _vocab_projection_kernel,
        out_shape=jax.ShapeDtypeStruct((B_pad, V_pad), jnp.float32),
        grid=(V_pad // TV,),
        in_specs=[pl.BlockSpec((B_pad, H), lambda j: (0, 0)),
                  pl.BlockSpec((H, TV), lambda j: (0, j)),
                  pl.BlockSpec((1, TV), lambda j: (0, j))],
        out_specs=pl.BlockSpec((B_pad, TV), lambda j: (0, j)),
        compiler_params=pltpu.CompilerParams(
            dimension_semantics=("parallel",),
            vmem_limit_bytes=_VMEM_LIMIT),
        cost_estimate=pl.CostEstimate(
            flops=2 * B_pad * H * V_pad,
            transcendentals=0,
            bytes_accessed=H * V_pad * 2 + B_pad * V_pad * 4 + B_pad * H * 4 + V_pad * 4),
    )(x_last, wo, bo)

    # TODO(synk): for very large V, emit per-tile row-max / exp-sum partials from the vocab
    # kernel and finish log_softmax from those instead of re-reading the full logits.
    log_probs = jax.nn.log_softmax(logits[:B, :V], axis=1)
    new_hidden = new_hidden_p[:, :B] if pad else new_hidden_p
    return log_probs, new_hidden


def _bf16_dot(a, w_bf16):
    return jnp.dot(a.astype(jnp.bfloat16), w_bf16, preferred_element_type=jnp.float32)


def reference_forward(input_sequences, hidden, sequences_lengths,
                      sequences_styles, encoder_outputs, params):
    """Pure-JAX reference mirroring the PyTorch forward (eval mode), using the same
    bf16-weight / bf16-encoder / f32-accumulate matmul recipe as the kernel."""
    H = hidden.shape[2]
    text_emb = params["text_emb"][input_sequences]
    style_emb = params["style_emb"][sequences_styles]
    comb = jnp.concatenate([text_emb, style_emb], axis=2)[0]
    last_hidden = hidden[-1]

    scores = (_bf16_dot(comb, params["wa_emb"])
              + _bf16_dot(last_hidden, params["wa_hid"]) + params["ba"])
    L = scores.shape[1]
    mask = jnp.arange(L)[None, :] < sequences_lengths[:, None]
    scores = jnp.where(mask, scores, -jnp.inf)
    attn_w = jax.nn.softmax(scores, axis=1)
    enc_bf = jnp.transpose(encoder_outputs, (1, 0, 2)).astype(jnp.bfloat16)   # (B, L, H)
    attn_applied = jnp.einsum("bl,blh->bh", attn_w.astype(jnp.bfloat16), enc_bf,
                              preferred_element_type=jnp.float32)

    x = (_bf16_dot(comb, params["wc_emb"])
         + _bf16_dot(attn_applied, params["wc_att"]) + params["bc"])
    x = jax.nn.relu(x)

    new_hidden = []
    for layer in range(hidden.shape[0]):
        h_prev = hidden[layer]
        gi = _bf16_dot(x, params["wih"][layer]) + params["bih"][layer]        # (B, 3H)
        gh = _bf16_dot(h_prev, params["whh"][layer]) + params["bhh"][layer]   # (B, 3H)
        r = jax.nn.sigmoid(gi[:, 0:H] + gh[:, 0:H])
        z = jax.nn.sigmoid(gi[:, H:2 * H] + gh[:, H:2 * H])
        n = jnp.tanh(gi[:, 2 * H:3 * H] + r * gh[:, 2 * H:3 * H])
        h_new = (1.0 - z) * n + z * h_prev
        new_hidden.append(h_new)
        x = h_new

    logits = _bf16_dot(x, params["wo"]) + params["bo"]
    return jax.nn.log_softmax(logits, axis=1), jnp.stack(new_hidden, axis=0)


def make_params(key, vocab_size, embed_dim, style_emb_dim, hidden_dim,
                num_styles, n_layers, max_seq_length):
    ks = jax.random.split(key, 12)
    ES = embed_dim + style_emb_dim
    scale = 0.1
    bf16 = jnp.bfloat16

    def rnd(k, shape):
        return scale * jax.random.normal(k, shape, jnp.float32)

    wa = rnd(ks[2], (ES + hidden_dim, max_seq_length))
    wc = rnd(ks[4], (ES + hidden_dim, hidden_dim))
    # GRU weights stored pre-transposed (in, out) with the 3 gates (r, z, n) packed along
    # the lane axis -> 2 MXU dots per layer in the kernel.
    wih = rnd(ks[6], (n_layers, hidden_dim, 3 * hidden_dim))
    whh = rnd(ks[8], (n_layers, hidden_dim, 3 * hidden_dim))
    return {
        "text_emb": rnd(ks[0], (vocab_size, embed_dim)),
        "style_emb": rnd(ks[1], (num_styles, style_emb_dim)),
        # attn / attn_combine weights split at the concat boundary (emb | hidden/attn)
        "wa_emb": wa[:ES].astype(bf16),
        "wa_hid": wa[ES:].astype(bf16),
        "ba": rnd(ks[3], (1, max_seq_length)),
        "wc_emb": wc[:ES].astype(bf16),
        "wc_att": wc[ES:].astype(bf16),
        "bc": rnd(ks[5], (1, hidden_dim)),
        "wih": wih.astype(bf16),
        "bih": rnd(ks[7], (n_layers, 1, 3 * hidden_dim)),
        "whh": whh.astype(bf16),
        "bhh": rnd(ks[9], (n_layers, 1, 3 * hidden_dim)),
        "wo": rnd(ks[10], (hidden_dim, vocab_size)).astype(bf16),
        "bo": rnd(ks[11], (1, vocab_size)),
    }


if __name__ == "__main__":
    # Small shapes consistent with the module; vocab a multiple of 128 so the
    # vocab-tiled projection runs a real 2-step grid.
    vocab_size, embed_dim, style_emb_dim = 256, 16, 8
    hidden_dim, num_styles, n_layers, max_seq_length = 32, 4, 2, 8
    B = 4

    key = jax.random.PRNGKey(0)
    kp, k1, k2, k3, k4 = jax.random.split(key, 5)
    params = make_params(kp, vocab_size, embed_dim, style_emb_dim, hidden_dim,
                         num_styles, n_layers, max_seq_length)

    input_sequences = jax.random.randint(k1, (1, B), 0, vocab_size)            # (T=1, B)
    sequences_styles = jax.random.randint(k2, (1, B), 0, num_styles)           # (T=1, B)
    sequences_lengths = jnp.array([8, 5, 3, 1], dtype=jnp.int32)               # (B,)
    hidden = jax.random.normal(k3, (n_layers, B, hidden_dim), jnp.float32)     # (nL, B, H)
    encoder_outputs = jax.random.normal(k4, (max_seq_length, B, hidden_dim),   # (L, B, H)
                                        jnp.float32)

    ref_lp, ref_h = reference_forward(
        input_sequences, hidden, sequences_lengths, sequences_styles,
        encoder_outputs, params)

    fwd = jax.jit(attention_decoder_forward)
    log_probs, new_hidden = fwd(input_sequences, hidden, sequences_lengths,
                                sequences_styles, encoder_outputs, params)
    jax.block_until_ready((log_probs, new_hidden))

    assert log_probs.shape == (B, vocab_size)
    assert new_hidden.shape == (n_layers, B, hidden_dim)
    assert jnp.allclose(log_probs, ref_lp, atol=2e-3, rtol=2e-3), \
        float(jnp.max(jnp.abs(log_probs - ref_lp)))
    assert jnp.allclose(new_hidden, ref_h, atol=2e-3, rtol=2e-3), \
        float(jnp.max(jnp.abs(new_hidden - ref_h)))

    print("KERNEL_OK")
</pallas_src>

<mosaic_0001>
module attributes {stable_mosaic.version = 11 : i64} {
  func.func @_vocab_projection_kernel(%arg0: i32, %arg1: memref<8x32xf32, #tpu.memory_space<vmem>>, %arg2: memref<32x128xbf16, #tpu.memory_space<vmem>>, %arg3: memref<1x128xf32, #tpu.memory_space<vmem>>, %arg4: memref<8x128xf32, #tpu.memory_space<vmem>>) attributes {dimension_semantics = [#tpu.dimension_semantics<parallel>], iteration_bounds = array<i64: 2>, scalar_prefetch = 0 : i64, scratch_operands = 0 : i64, tpu.core_type = #tpu.core_type<tc>, window_params = [{pipeline_mode = #tpu.pipeline_mode<synchronous>, transform_indices = @transform_0, window_bounds = array<i64: 8, 32>}, {transform_indices = @transform_1, window_bounds = array<i64: 32, 128>}, {transform_indices = @transform_2, window_bounds = array<i64: 1, 128>}, {transform_indices = @transform_3, window_bounds = array<i64: 8, 128>}]} {
    %c0 = arith.constant 0 : index
    %c0_0 = arith.constant 0 : index
    %0 = vector.load %arg1[%c0, %c0_0] : memref<8x32xf32, #tpu.memory_space<vmem>>, vector<8x32xf32>
    %1 = arith.truncf %0 : vector<8x32xf32> to vector<8x32xbf16>
    %c0_1 = arith.constant 0 : index
    %c0_2 = arith.constant 0 : index
    %2 = vector.load %arg2[%c0_1, %c0_2] : memref<32x128xbf16, #tpu.memory_space<vmem>>, vector<32x128xbf16>
    %cst = arith.constant dense<0.000000e+00> : vector<8x128xf32>
    %3 = tpu.matmul %1, %2, %cst {dimension_numbers = #tpu.dot_dimension_numbers<[1], [0], [0], [1], [0, 0, 1, 1], [], []>} : vector<8x32xbf16>, vector<32x128xbf16>, vector<8x128xf32> -> vector<8x128xf32>
    %c0_3 = arith.constant 0 : index
    %c0_4 = arith.constant 0 : index
    %4 = vector.load %arg3[%c0_3, %c0_4] : memref<1x128xf32, #tpu.memory_space<vmem>>, vector<1x128xf32>
    %5 = vector.broadcast %4 : vector<1x128xf32> to vector<8x128xf32>
    %6 = arith.addf %3, %5 : vector<8x128xf32>
    %c0_5 = arith.constant 0 : index
    %c0_6 = arith.constant 0 : index
    %7 = vector.load %arg4[%c0_5, %c0_6] : memref<8x128xf32, #tpu.memory_space<vmem>>, vector<8x128xf32>
    tpu.vector_store %arg4[%c0_5, %c0_6], %6 {strides = array<i32>} : memref<8x128xf32, #tpu.memory_space<vmem>>, vector<8x128xf32>,
    return
  }
  func.func @transform_0(%arg0: i32) -> (i32, i32) {
    %c0_i32 = arith.constant 0 : i32
    %c0_i32_0 = arith.constant 0 : i32
    %c0_i32_1 = arith.constant 0 : i32
    return %c0_i32, %c0_i32_0 : i32, i32
  }
  func.func @transform_1(%arg0: i32) -> (i32, i32) {
    %c0_i32 = arith.constant 0 : i32
    %c0_i32_0 = arith.constant 0 : i32
    return %c0_i32, %arg0 : i32, i32
  }
  func.func @transform_2(%arg0: i32) -> (i32, i32) {
    %c0_i32 = arith.constant 0 : i32
    %c0_i32_0 = arith.constant 0 : i32
    return %c0_i32, %arg0 : i32, i32
  }
  func.func @transform_3(%arg0: i32) -> (i32, i32) {
    %c0_i32 = arith.constant 0 : i32
    %c0_i32_0 = arith.constant 0 : i32
    return %c0_i32, %arg0 : i32, i32
  }
}

module attributes {stable_mosaic.version = 11 : i64} {
  func.func @_decode_step_kernel(%arg0: memref<8x24xf32, #tpu.memory_space<vmem>>, %arg1: memref<8x256xbf16, #tpu.memory_space<vmem>>, %arg2: memref<8x1xi32, #tpu.memory_space<vmem>>, %arg3: memref<2x8x32xf32, #tpu.memory_space<vmem>>, %arg4: memref<24x8xbf16, #tpu.memory_space<vmem>>, %arg5: memref<32x8xbf16, #tpu.memory_space<vmem>>, %arg6: memref<1x8xf32, #tpu.memory_space<vmem>>, %arg7: memref<24x32xbf16, #tpu.memory_space<vmem>>, %arg8: memref<32x32xbf16, #tpu.memory_space<vmem>>, %arg9: memref<1x32xf32, #tpu.memory_space<vmem>>, %arg10: memref<2x32x96xbf16, #tpu.memory_space<vmem>>, %arg11: memref<2x1x96xf32, #tpu.memory_space<vmem>>, %arg12: memref<2x32x96xbf16, #tpu.memory_space<vmem>>, %arg13: memref<2x1x96xf32, #tpu.memory_space<vmem>>, %arg14: memref<2x8x32xf32, #tpu.memory_space<vmem>>, %arg15: memref<8x32xf32, #tpu.memory_space<vmem>>) attributes {dimension_semantics = [], scalar_prefetch = 0 : i64, scratch_operands = 0 : i64, tpu.core_type = #tpu.core_type<tc>} {
    %c0 = arith.constant 0 : index
    %c0_0 = arith.constant 0 : index
    %0 = vector.load %arg0[%c0, %c0_0] : memref<8x24xf32, #tpu.memory_space<vmem>>, vector<8x24xf32>
    %c1 = arith.constant 1 : index
    %c0_1 = arith.constant 0 : index
    %c0_2 = arith.constant 0 : index
    %1 = vector.load %arg3[%c1, %c0_1, %c0_2] : memref<2x8x32xf32, #tpu.memory_space<vmem>>, vector<1x8x32xf32>
    %2 = vector.shape_cast %1 : vector<1x8x32xf32> to vector<8x32xf32>
    %3 = arith.truncf %0 : vector<8x24xf32> to vector<8x24xbf16>
    %c0_3 = arith.constant 0 : index
    %c0_4 = arith.constant 0 : index
    %4 = vector.load %arg4[%c0_3, %c0_4] : memref<24x8xbf16, #tpu.memory_space<vmem>>, vector<24x8xbf16>
    %cst = arith.constant dense<0.000000e+00> : vector<8x8xf32>
    %5 = tpu.matmul %3, %4, %cst {dimension_numbers = #tpu.dot_dimension_numbers<[1], [0], [0], [1], [0, 0, 1, 1], [], []>} : vector<8x24xbf16>, vector<24x8xbf16>, vector<8x8xf32> -> vector<8x8xf32>
    %6 = arith.truncf %2 : vector<8x32xf32> to vector<8x32xbf16>
    %c0_5 = arith.constant 0 : index
    %c0_6 = arith.constant 0 : index
    %7 = vector.load %arg5[%c0_5, %c0_6] : memref<32x8xbf16, #tpu.memory_space<vmem>>, vector<32x8xbf16>
    %cst_7 = arith.constant dense<0.000000e+00> : vector<8x8xf32>
    %8 = tpu.matmul %6, %7, %cst_7 {dimension_numbers = #tpu.dot_dimension_numbers<[1], [0], [0], [1], [0, 0, 1, 1], [], []>} : vector<8x32xbf16>, vector<32x8xbf16>, vector<8x8xf32> -> vector<8x8xf32>
    %9 = arith.addf %5, %8 : vector<8x8xf32>
    %c0_8 = arith.constant 0 : index
    %c0_9 = arith.constant 0 : index
    %10 = vector.load %arg6[%c0_8, %c0_9] : memref<1x8xf32, #tpu.memory_space<vmem>>, vector<1x8xf32>
    %11 = vector.broadcast %10 : vector<1x8xf32> to vector<8x8xf32>
    %12 = arith.addf %9, %11 : vector<8x8xf32>
    %13 = tpu.iota {dimensions = array<i32: 1>} : vector<8x8xi32>
    %c0_10 = arith.constant 0 : index
    %c0_11 = arith.constant 0 : index
    %14 = vector.load %arg2[%c0_10, %c0_11] : memref<8x1xi32, #tpu.memory_space<vmem>>, vector<8x1xi32>
    %15 = vector.broadcast %14 : vector<8x1xi32> to vector<8x8xi32>
    %16 = arith.cmpi slt, %13, %15 : vector<8x8xi32>
    %cst_12 = arith.constant -1.000000e+30 : f32
    %17 = vector.broadcast %cst_12 : f32 to vector<8x8xf32>
    %18 = arith.select %16, %12, %17 : vector<8x8xi1>, vector<8x8xf32>
    %cst_13 = arith.constant dense<0xFF800000> : vector<8xf32>
    %19 = vector.multi_reduction <maximumf>, %18, %cst_13 [1] : vector<8x8xf32> to vector<8xf32>
    %20 = vector.shape_cast %19 : vector<8xf32> to vector<8x1xf32>
    %21 = vector.broadcast %20 : vector<8x1xf32> to vector<8x8xf32>
    %22 = arith.subf %18, %21 : vector<8x8xf32>
    %23 = math.exp %22 : vector<8x8xf32>
    %cst_14 = arith.constant dense<0.000000e+00> : vector<8xf32>
    %24 = vector.multi_reduction <add>, %23, %cst_14 [1] : vector<8x8xf32> to vector<8xf32>
    %25 = vector.shape_cast %24 : vector<8xf32> to vector<8x1xf32>
    %26 = vector.broadcast %25 : vector<8x1xf32> to vector<8x8xf32>
    %27 = arith.divf %23, %26 : vector<8x8xf32>
    %28 = arith.truncf %27 : vector<8x8xf32> to vector<8x8xbf16>
    %c0_15 = arith.constant 0 : index
    %c0_16 = arith.constant 0 : index
    %29 = vector.load %arg1[%c0_15, %c0_16] : memref<8x256xbf16, #tpu.memory_space<vmem>>, vector<8x256xbf16>
    %cst_17 = arith.constant dense<0.000000e+00> : vector<8x256xf32>
    %30 = tpu.matmul %28, %29, %cst_17 {dimension_numbers = #tpu.dot_dimension_numbers<[1], [0], [0], [1], [0, 0, 1, 1], [], []>} : vector<8x8xbf16>, vector<8x256xbf16>, vector<8x256xf32> -> vector<8x256xf32>
    %31 = tpu.iota {dimensions = array<i32: 0>} : vector<8x32xi32>
    %cst_18 = arith.constant 0.000000e+00 : f32
    %32 = vector.broadcast %cst_18 : f32 to vector<8x32xf32>
    %c0_i32 = arith.constant 0 : i32
    %33 = vector.broadcast %c0_i32 : i32 to vector<8x32xi32>
    %34 = arith.cmpi eq, %31, %33 : vector<8x32xi32>
    %35 = vector.extract_strided_slice %30 {offsets = [0, 0], sizes = [8, 32], strides = [1, 1]} : vector<8x256xf32> to vector<8x32xf32>
    %cst_19 = arith.constant 0.000000e+00 : f32
    %36 = vector.broadcast %cst_19 : f32 to vector<8x32xf32>
    %37 = arith.select %34, %35, %36 : vector<8x32xi1>, vector<8x32xf32>
    %38 = arith.addf %32, %37 : vector<8x32xf32>
    %c1_i32 = arith.constant 1 : i32
    %39 = vector.broadcast %c1_i32 : i32 to vector<8x32xi32>
    %40 = arith.cmpi eq, %31, %39 : vector<8x32xi32>
    %41 = vector.extract_strided_slice %30 {offsets = [0, 32], sizes = [8, 32], strides = [1, 1]} : vector<8x256xf32> to vector<8x32xf32>
    %cst_20 = arith.constant 0.000000e+00 : f32
    %42 = vector.broadcast %cst_20 : f32 to vector<8x32xf32>
    %43 = arith.select %40, %41, %42 : vector<8x32xi1>, vector<8x32xf32>
    %44 = arith.addf %38, %43 : vector<8x32xf32>
    %c2_i32 = arith.constant 2 : i32
    %45 = vector.broadcast %c2_i32 : i32 to vector<8x32xi32>
    %46 = arith.cmpi eq, %31, %45 : vector<8x32xi32>
    %47 = vector.extract_strided_slice %30 {offsets = [0, 64], sizes = [8, 32], strides = [1, 1]} : vector<8x256xf32> to vector<8x32xf32>
    %cst_21 = arith.constant 0.000000e+00 : f32
    %48 = vector.broadcast %cst_21 : f32 to vector<8x32xf32>
    %49 = arith.select %46, %47, %48 : vector<8x32xi1>, vector<8x32xf32>
    %50 = arith.addf %44, %49 : vector<8x32xf32>
    %c3_i32 = arith.constant 3 : i32
    %51 = vector.broadcast %c3_i32 : i32 to vector<8x32xi32>
    %52 = arith.cmpi eq, %31, %51 : vector<8x32xi32>
    %53 = vector.extract_strided_slice %30 {offsets = [0, 96], sizes = [8, 32], strides = [1, 1]} : vector<8x256xf32> to vector<8x32xf32>
    %cst_22 = arith.constant 0.000000e+00 : f32
    %54 = vector.broadcast %cst_22 : f32 to vector<8x32xf32>
    %55 = arith.select %52, %53, %54 : vector<8x32xi1>, vector<8x32xf32>
    %56 = arith.addf %50, %55 : vector<8x32xf32>
    %c4_i32 = arith.constant 4 : i32
    %57 = vector.broadcast %c4_i32 : i32 to vector<8x32xi32>
    %58 = arith.cmpi eq, %31, %57 : vector<8x32xi32>
    %59 = vector.extract_strided_slice %30 {offsets = [0, 128], sizes = [8, 32], strides = [1, 1]} : vector<8x256xf32> to vector<8x32xf32>
    %cst_23 = arith.constant 0.000000e+00 : f32
    %60 = vector.broadcast %cst_23 : f32 to vector<8x32xf32>
    %61 = arith.select %58, %59, %60 : vector<8x32xi1>, vector<8x32xf32>
    %62 = arith.addf %56, %61 : vector<8x32xf32>
    %c5_i32 = arith.constant 5 : i32
    %63 = vector.broadcast %c5_i32 : i32 to vector<8x32xi32>
    %64 = arith.cmpi eq, %31, %63 : vector<8x32xi32>
    %65 = vector.extract_strided_slice %30 {offsets = [0, 160], sizes = [8, 32], strides = [1, 1]} : vector<8x256xf32> to vector<8x32xf32>
    %cst_24 = arith.constant 0.000000e+00 : f32
    %66 = vector.broadcast %cst_24 : f32 to vector<8x32xf32>
    %67 = arith.select %64, %65, %66 : vector<8x32xi1>, vector<8x32xf32>
    %68 = arith.addf %62, %67 : vector<8x32xf32>
    %c6_i32 = arith.constant 6 : i32
    %69 = vector.broadcast %c6_i32 : i32 to vector<8x32xi32>
    %70 = arith.cmpi eq, %31, %69 : vector<8x32xi32>
    %71 = vector.extract_strided_slice %30 {offsets = [0, 192], sizes = [8, 32], strides = [1, 1]} : vector<8x256xf32> to vector<8x32xf32>
    %cst_25 = arith.constant 0.000000e+00 : f32
    %72 = vector.broadcast %cst_25 : f32 to vector<8x32xf32>
    %73 = arith.select %70, %71, %72 : vector<8x32xi1>, vector<8x32xf32>
    %74 = arith.addf %68, %73 : vector<8x32xf32>
    %c7_i32 = arith.constant 7 : i32
    %75 = vector.broadcast %c7_i32 : i32 to vector<8x32xi32>
    %76 = arith.cmpi eq, %31, %75 : vector<8x32xi32>
    %77 = vector.extract_strided_slice %30 {offsets = [0, 224], sizes = [8, 32], strides = [1, 1]} : vector<8x256xf32> to vector<8x32xf32>
    %cst_26 = arith.constant 0.000000e+00 : f32
    %78 = vector.broadcast %cst_26 : f32 to vector<8x32xf32>
    %79 = arith.select %76, %77, %78 : vector<8x32xi1>, vector<8x32xf32>
    %80 = arith.addf %74, %79 : vector<8x32xf32>
    %c0_27 = arith.constant 0 : index
    %c0_28 = arith.constant 0 : index
    %81 = vector.load %arg7[%c0_27, %c0_28] : memref<24x32xbf16, #tpu.memory_space<vmem>>, vector<24x32xbf16>
    %cst_29 = arith.constant dense<0.000000e+00> : vector<8x32xf32>
    %82 = tpu.matmul %3, %81, %cst_29 {dimension_numbers = #tpu.dot_dimension_numbers<[1], [0], [0], [1], [0, 0, 1, 1], [], []>} : vector<8x24xbf16>, vector<24x32xbf16>, vector<8x32xf32> -> vector<8x32xf32>
    %83 = arith.truncf %80 : vector<8x32xf32> to vector<8x32xbf16>
    %c0_30 = arith.constant 0 : index
    %c0_31 = arith.constant 0 : index
    %84 = vector.load %arg8[%c0_30, %c0_31] : memref<32x32xbf16, #tpu.memory_space<vmem>>, vector<32x32xbf16>
    %cst_32 = arith.constant dense<0.000000e+00> : vector<8x32xf32>
    %85 = tpu.matmul %83, %84, %cst_32 {dimension_numbers = #tpu.dot_dimension_numbers<[1], [0], [0], [1], [0, 0, 1, 1], [], []>} : vector<8x32xbf16>, vector<32x32xbf16>, vector<8x32xf32> -> vector<8x32xf32>
    %86 = arith.addf %82, %85 : vector<8x32xf32>
    %c0_33 = arith.constant 0 : index
    %c0_34 = arith.constant 0 : index
    %87 = vector.load %arg9[%c0_33, %c0_34] : memref<1x32xf32, #tpu.memory_space<vmem>>, vector<1x32xf32>
    %88 = vector.broadcast %87 : vector<1x32xf32> to vector<8x32xf32>
    %89 = arith.addf %86, %88 : vector<8x32xf32>
    %cst_35 = arith.constant 0.000000e+00 : f32
    %90 = vector.broadcast %cst_35 : f32 to vector<8x32xf32>
    %91 = arith.maximumf %89, %90 : vector<8x32xf32>
    %c0_36 = arith.constant 0 : index
    %c0_37 = arith.constant 0 : index
    %c0_38 = arith.constant 0 : index
    %92 = vector.load %arg3[%c0_36, %c0_37, %c0_38] : memref<2x8x32xf32, #tpu.memory_space<vmem>>, vector<1x8x32xf32>
    %93 = vector.shape_cast %92 : vector<1x8x32xf32> to vector<8x32xf32>
    %94 = arith.truncf %91 : vector<8x32xf32> to vector<8x32xbf16>
    %c0_39 = arith.constant 0 : index
    %c0_40 = arith.constant 0 : index
    %c0_41 = arith.constant 0 : index
    %95 = vector.load %arg10[%c0_39, %c0_40, %c0_41] : memref<2x32x96xbf16, #tpu.memory_space<vmem>>, vector<1x32x96xbf16>
    %96 = vector.shape_cast %95 : vector<1x32x96xbf16> to vector<32x96xbf16>
    %cst_42 = arith.constant dense<0.000000e+00> : vector<8x96xf32>
    %97 = tpu.matmul %94, %96, %cst_42 {dimension_numbers = #tpu.dot_dimension_numbers<[1], [0], [0], [1], [0, 0, 1, 1], [], []>} : vector<8x32xbf16>, vector<32x96xbf16>, vector<8x96xf32> -> vector<8x96xf32>
    %c0_43 = arith.constant 0 : index
    %c0_44 = arith.constant 0 : index
    %c0_45 = arith.constant 0 : index
    %98 = vector.load %arg11[%c0_43, %c0_44, %c0_45] : memref<2x1x96xf32, #tpu.memory_space<vmem>>, vector<1x1x96xf32>
    %99 = vector.shape_cast %98 : vector<1x1x96xf32> to vector<1x96xf32>
    %100 = vector.broadcast %99 : vector<1x96xf32> to vector<8x96xf32>
    %101 = arith.addf %97, %100 : vector<8x96xf32>
    %102 = arith.truncf %93 : vector<8x32xf32> to vector<8x32xbf16>
    %c0_46 = arith.constant 0 : index
    %c0_47 = arith.constant 0 : index
    %c0_48 = arith.constant 0 : index
    %103 = vector.load %arg12[%c0_46, %c0_47, %c0_48] : memref<2x32x96xbf16, #tpu.memory_space<vmem>>, vector<1x32x96xbf16>
    %104 = vector.shape_cast %103 : vector<1x32x96xbf16> to vector<32x96xbf16>
    %cst_49 = arith.constant dense<0.000000e+00> : vector<8x96xf32>
    %105 = tpu.matmul %102, %104, %cst_49 {dimension_numbers = #tpu.dot_dimension_numbers<[1], [0], [0], [1], [0, 0, 1, 1], [], []>} : vector<8x32xbf16>, vector<32x96xbf16>, vector<8x96xf32> -> vector<8x96xf32>
    %c0_50 = arith.constant 0 : index
    %c0_51 = arith.constant 0 : index
    %c0_52 = arith.constant 0 : index
    %106 = vector.load %arg13[%c0_50, %c0_51, %c0_52] : memref<2x1x96xf32, #tpu.memory_space<vmem>>, vector<1x1x96xf32>
    %107 = vector.shape_cast %106 : vector<1x1x96xf32> to vector<1x96xf32>
    %108 = vector.broadcast %107 : vector<1x96xf32> to vector<8x96xf32>
    %109 = arith.addf %105, %108 : vector<8x96xf32>
    %110 = vector.extract_strided_slice %101 {offsets = [0, 0], sizes = [8, 32], strides = [1, 1]} : vector<8x96xf32> to vector<8x32xf32>
    %111 = vector.extract_strided_slice %109 {offsets = [0, 0], sizes = [8, 32], strides = [1, 1]} : vector<8x96xf32> to vector<8x32xf32>
    %112 = arith.addf %110, %111 : vector<8x32xf32>
    %113 = arith.negf %112 : vector<8x32xf32>
    %114 = math.exp %113 : vector<8x32xf32>
    %cst_53 = arith.constant 1.000000e+00 : f32
    %115 = vector.broadcast %cst_53 : f32 to vector<8x32xf32>
    %116 = arith.addf %115, %114 : vector<8x32xf32>
    %117 = arith.divf %115, %116 : vector<8x32xf32>
    %118 = vector.extract_strided_slice %101 {offsets = [0, 32], sizes = [8, 32], strides = [1, 1]} : vector<8x96xf32> to vector<8x32xf32>
    %119 = vector.extract_strided_slice %109 {offsets = [0, 32], sizes = [8, 32], strides = [1, 1]} : vector<8x96xf32> to vector<8x32xf32>
    %120 = arith.addf %118, %119 : vector<8x32xf32>
    %121 = arith.negf %120 : vector<8x32xf32>
    %122 = math.exp %121 : vector<8x32xf32>
    %cst_54 = arith.constant 1.000000e+00 : f32
    %123 = vector.broadcast %cst_54 : f32 to vector<8x32xf32>
    %124 = arith.addf %123, %122 : vector<8x32xf32>
    %125 = arith.divf %123, %124 : vector<8x32xf32>
    %126 = vector.extract_strided_slice %101 {offsets = [0, 64], sizes = [8, 32], strides = [1, 1]} : vector<8x96xf32> to vector<8x32xf32>
    %127 = vector.extract_strided_slice %109 {offsets = [0, 64], sizes = [8, 32], strides = [1, 1]} : vector<8x96xf32> to vector<8x32xf32>
    %128 = arith.mulf %117, %127 : vector<8x32xf32>
    %129 = arith.addf %126, %128 : vector<8x32xf32>
    %130 = math.tanh %129 : vector<8x32xf32>
    %cst_55 = arith.constant 1.000000e+00 : f32
    %131 = vector.broadcast %cst_55 : f32 to vector<8x32xf32>
    %132 = arith.subf %131, %125 : vector<8x32xf32>
    %133 = arith.mulf %132, %130 : vector<8x32xf32>
    %134 = arith.mulf %125, %93 : vector<8x32xf32>
    %135 = arith.addf %133, %134 : vector<8x32xf32>
    %c0_56 = arith.constant 0 : index
    %c0_57 = arith.constant 0 : index
    %c0_58 = arith.constant 0 : index
    %136 = vector.load %arg14[%c0_56, %c0_57, %c0_58] : memref<2x8x32xf32, #tpu.memory_space<vmem>>, vector<1x8x32xf32>
    %137 = vector.shape_cast %136 : vector<1x8x32xf32> to vector<8x32xf32>
    %138 = vector.shape_cast %135 : vector<8x32xf32> to vector<1x8x32xf32>
    tpu.vector_store %arg14[%c0_56, %c0_57, %c0_58], %138 {strides = array<i32>} : memref<2x8x32xf32, #tpu.memory_space<vmem>>, vector<1x8x32xf32>,
    %c1_59 = arith.constant 1 : index
    %c0_60 = arith.constant 0 : index
    %c0_61 = arith.constant 0 : index
    %139 = vector.load %arg3[%c1_59, %c0_60, %c0_61] : memref<2x8x32xf32, #tpu.memory_space<vmem>>, vector<1x8x32xf32>
    %140 = vector.shape_cast %139 : vector<1x8x32xf32> to vector<8x32xf32>
    %141 = arith.truncf %135 : vector<8x32xf32> to vector<8x32xbf16>
    %c1_62 = arith.constant 1 : index
    %c0_63 = arith.constant 0 : index
    %c0_64 = arith.constant 0 : index
    %142 = vector.load %arg10[%c1_62, %c0_63, %c0_64] : memref<2x32x96xbf16, #tpu.memory_space<vmem>>, vector<1x32x96xbf16>
    %143 = vector.shape_cast %142 : vector<1x32x96xbf16> to vector<32x96xbf16>
    %cst_65 = arith.constant dense<0.000000e+00> : vector<8x96xf32>
    %144 = tpu.matmul %141, %143, %cst_65 {dimension_numbers = #tpu.dot_dimension_numbers<[1], [0], [0], [1], [0, 0, 1, 1], [], []>} : vector<8x32xbf16>, vector<32x96xbf16>, vector<8x96xf32> -> vector<8x96xf32>
    %c1_66 = arith.constant 1 : index
    %c0_67 = arith.constant 0 : index
    %c0_68 = arith.constant 0 : index
    %145 = vector.load %arg11[%c1_66, %c0_67, %c0_68] : memref<2x1x96xf32, #tpu.memory_space<vmem>>, vector<1x1x96xf32>
    %146 = vector.shape_cast %145 : vector<1x1x96xf32> to vector<1x96xf32>
    %147 = vector.broadcast %146 : vector<1x96xf32> to vector<8x96xf32>
    %148 = arith.addf %144, %147 : vector<8x96xf32>
    %149 = arith.truncf %140 : vector<8x32xf32> to vector<8x32xbf16>
    %c1_69 = arith.constant 1 : index
    %c0_70 = arith.constant 0 : index
    %c0_71 = arith.constant 0 : index
    %150 = vector.load %arg12[%c1_69, %c0_70, %c0_71] : memref<2x32x96xbf16, #tpu.memory_space<vmem>>, vector<1x32x96xbf16>
    %151 = vector.shape_cast %150 : vector<1x32x96xbf16> to vector<32x96xbf16>
    %cst_72 = arith.constant dense<0.000000e+00> : vector<8x96xf32>
    %152 = tpu.matmul %149, %151, %cst_72 {dimension_numbers = #tpu.dot_dimension_numbers<[1], [0], [0], [1], [0, 0, 1, 1], [], []>} : vector<8x32xbf16>, vector<32x96xbf16>, vector<8x96xf32> -> vector<8x96xf32>
    %c1_73 = arith.constant 1 : index
    %c0_74 = arith.constant 0 : index
    %c0_75 = arith.constant 0 : index
    %153 = vector.load %arg13[%c1_73, %c0_74, %c0_75] : memref<2x1x96xf32, #tpu.memory_space<vmem>>, vector<1x1x96xf32>
    %154 = vector.shape_cast %153 : vector<1x1x96xf32> to vector<1x96xf32>
    %155 = vector.broadcast %154 : vector<1x96xf32> to vector<8x96xf32>
    %156 = arith.addf %152, %155 : vector<8x96xf32>
    %157 = vector.extract_strided_slice %148 {offsets = [0, 0], sizes = [8, 32], strides = [1, 1]} : vector<8x96xf32> to vector<8x32xf32>
    %158 = vector.extract_strided_slice %156 {offsets = [0, 0], sizes = [8, 32], strides = [1, 1]} : vector<8x96xf32> to vector<8x32xf32>
    %159 = arith.addf %157, %158 : vector<8x32xf32>
    %160 = arith.negf %159 : vector<8x32xf32>
    %161 = math.exp %160 : vector<8x32xf32>
    %cst_76 = arith.constant 1.000000e+00 : f32
    %162 = vector.broadcast %cst_76 : f32 to vector<8x32xf32>
    %163 = arith.addf %162, %161 : vector<8x32xf32>
    %164 = arith.divf %162, %163 : vector<8x32xf32>
    %165 = vector.extract_strided_slice %148 {offsets = [0, 32], sizes = [8, 32], strides = [1, 1]} : vector<8x96xf32> to vector<8x32xf32>
    %166 = vector.extract_strided_slice %156 {offsets = [0, 32], sizes = [8, 32], strides = [1, 1]} : vector<8x96xf32> to vector<8x32xf32>
    %167 = arith.addf %165, %166 : vector<8x32xf32>
    %168 = arith.negf %167 : vector<8x32xf32>
    %169 = math.exp %168 : vector<8x32xf32>
    %cst_77 = arith.constant 1.000000e+00 : f32
    %170 = vector.broadcast %cst_77 : f32 to vector<8x32xf32>
    %171 = arith.addf %170, %169 : vector<8x32xf32>
    %172 = arith.divf %170, %171 : vector<8x32xf32>
    %173 = vector.extract_strided_slice %148 {offsets = [0, 64], sizes = [8, 32], strides = [1, 1]} : vector<8x96xf32> to vector<8x32xf32>
    %174 = vector.extract_strided_slice %156 {offsets = [0, 64], sizes = [8, 32], strides = [1, 1]} : vector<8x96xf32> to vector<8x32xf32>
    %175 = arith.mulf %164, %174 : vector<8x32xf32>
    %176 = arith.addf %173, %175 : vector<8x32xf32>
    %177 = math.tanh %176 : vector<8x32xf32>
    %cst_78 = arith.constant 1.000000e+00 : f32
    %178 = vector.broadcast %cst_78 : f32 to vector<8x32xf32>
    %179 = arith.subf %178, %172 : vector<8x32xf32>
    %180 = arith.mulf %179, %177 : vector<8x32xf32>
    %181 = arith.mulf %172, %140 : vector<8x32xf32>
    %182 = arith.addf %180, %181 : vector<8x32xf32>
    %c1_79 = arith.constant 1 : index
    %c0_80 = arith.constant 0 : index
    %c0_81 = arith.constant 0 : index
    %183 = vector.load %arg14[%c1_79, %c0_80, %c0_81] : memref<2x8x32xf32, #tpu.memory_space<vmem>>, vector<1x8x32xf32>
    %184 = vector.shape_cast %183 : vector<1x8x32xf32> to vector<8x32xf32>
    %185 = vector.shape_cast %182 : vector<8x32xf32> to vector<1x8x32xf32>
    tpu.vector_store %arg14[%c1_79, %c0_80, %c0_81], %185 {strides = array<i32>} : memref<2x8x32xf32, #tpu.memory_space<vmem>>, vector<1x8x32xf32>,
    %c0_82 = arith.constant 0 : index
    %c0_83 = arith.constant 0 : index
    %186 = vector.load %arg15[%c0_82, %c0_83] : memref<8x32xf32, #tpu.memory_space<vmem>>, vector<8x32xf32>
    tpu.vector_store %arg15[%c0_82, %c0_83], %182 {strides = array<i32>} : memref<8x32xf32, #tpu.memory_space<vmem>>, vector<8x32xf32>,
    return
  }
}

</mosaic_0001>

<bundles_post_ra>
// kernel: attention_decoder_forward.3
= control target key start
LH: loop header
LB: loop body
LE: loop exit
PB: predicated region body
PF: predicated region fallthrough
CT: control target
= control target key end

     0   :  { %s475_s12 = smov 0   ;;  %s477_s13 = smov 0   ;;  %s535_s0 = inlined_call_operand.vmem [shape: f32[8,32], index: 0, kind: input, shape index: {}]   ;;  %s536_s1 = inlined_call_operand.vmem [shape: bf16[32,256], index: 1, kind: input, shape index: {}]   ;;  %s537_s2 = inlined_call_operand.vmem [shape: f32[1,256], index: 2, kind: input, shape index: {}]   ;;  %s538_s3 = inlined_call_operand.vmem [shape: f32[8,256], index: 3, kind: output, shape index: {}]  }
   0x1   :  { %s479_s14 = smov 0  }
   0x2 LB: > { %s375_s15 = sadd.s32 4294967295, %s451_s14   ;;  %s492_s16 = sadd.s32 1, %s451_s14   ;;  %s451_s14 = sphi %s479_s14, %s541_s14   ;;  %s447_s13 = sphi %s477_s13, %s540_s13   ;;  %s443_s12 = sphi %s475_s12, %s539_s12  }
   0x3   : > { %s38_s17 = ssub.s32 %s451_s14, %s492_s16  ;;  %s41_s18 = sadd.s32 1, %s447_s13 }
   0x4   : > { %p39_p0 = scmp.eq.s32.totalorder %s38_s17, 0  ;;  %p48_p1 = scmp.ne.s32.totalorder %s447_s13, %s443_s12 }
   0x5   : > { %p49_p2 = scmp.eq.s32.totalorder %s451_s14, 0  ;;  %p378_p4 = scmp.ge.s32.totalorder %s451_s14, 2 }
   0x6   : > { %s501_s19 = scalar_select %p39_p0, %s447_s13, %s41_s18  }
   0x7   : > { %p50_p3 = por %p49_p2, %p48_p1  ;;  %129 = sbr.rel (%p378_p4) target bundleno = 21 (0x15), region = 20 }
   0xe   : > { %132 = sbr.rel (!%p50_p3) target bundleno = 21 (0x15), region = 24  ;;  %s134_s20 = sand.u32 (%p50_p3), 1, %s447_s13  }
   0xf   : > { %s380_s21 = sshll.u32 (%p50_p3), %s451_s14, 2  ;;  %s379_s22 = sshll.u32 (%p50_p3), %s134_s20, 4 }
  0x10   : > { %s138_s25 = scalar_lea.vmem (%p50_p3), %s536_s1, %s380_s21  ;;  %s136_s26 = scalar_lea.vmem (%p50_p3), [#allocation2], %s379_s22 }
  0x11   : > { %v154_v0 = vld [vmem:[%s138_s25] sm:$0xf] (%p50_p3)  ;;  %v156_v1 = vld [vmem:[%s138_s25 + $0x8] sm:$0xf] (%p50_p3)  ;;  %v158_v2 = vld [vmem:[%s138_s25 + $0x10] sm:$0xf] (%p50_p3) }
  0x12   : > { %155 = vst [vmem:[%s136_s26] sm:$0xf] (%p50_p3), %v154_v0  ;;  %157 = vst [vmem:[%s136_s26 + $0x4] sm:$0xf] (%p50_p3), %v156_v1  ;;  %v160_v3 = vld [vmem:[%s138_s25 + $0x18] sm:$0xf] (%p50_p3) }
  0x13   : > { %159 = vst [vmem:[%s136_s26 + $0x8] sm:$0xf] (%p50_p3), %v158_v2  ;;  %161 = vst [vmem:[%s136_s26 + $0xc] sm:$0xf] (%p50_p3), %v160_v3 }
  0x15 PF: > { %p381_p5 = scmp.ge.s32.totalorder %s451_s14, 1  ;;  %p197_p6 = scmp.lt.s32.totalorder %s451_s14, 3 }
  0x17   : > { %p198_p7 = pnand %p381_p5, %p197_p6 }
  0x18   : > { %s204_s27 = sand.u32 (!%p198_p7), 1, %s443_s12   ;;  %v453_v4 = vmov (!%p198_p7), 0.0   ;;  %vm454_vm0 = vmmov (!%p198_p7), 0   ;;  %v237_v7 = vld [vmem:[%s535_s0] sm:$0xff] (!%p198_p7)  ;;  %vm262_vm1 = vcmask (!%p198_p7), 261120   ;;  %p229_p8 = scmp.lt.s32.totalorder (!%p198_p7), %s375_s15, 1 }
  0x19   : > { %201 = sbr.rel (%p198_p7) target bundleno = 250 (0xfa), region = 69  ;;  %393 = vmatprep.subr.bf16.mxu0 (!%p198_p7), %v453_v4  ;;  %s382_s28 = sshll.u32 (!%p198_p7), %s204_s27, 4  ;;  %397 = vmatprep.mubr.msk.bf16.mxu0 (!%p198_p7), %vm454_vm0, %v453_v4  ;;  %v238_v8 = vpack.c.bf16 (!%p198_p7), %v237_v7, %v237_v7 }
  0x1a   : > { %s206_s29 = scalar_lea.vmem (!%p198_p7), [#allocation2], %s382_s28 }
  0x1b   : > { %v427_v5 = vld [vmem:[%s206_s29] sm:$0xff] (!%p198_p7)   ;;  %v428_v6 = vld [vmem:[%s206_s29 + $0x8] sm:$0xff] (!%p198_p7)  }
  0x1c   : > { %394 = vmatpush3.bf16.msra.mxu0 (!%p198_p7), %v427_v5 }
  0x1d   : > { %395 = vmatprep.subr.bf16.mxu0 (!%p198_p7), %v453_v4 }
  0x20   : > { %396 = vmatpush3.bf16.msra.mxu0 %v428_v6  ;;  %s543_s15 = smov (!%p229_p8, %s375_s15), 1 }
  0x21   : > { %s231_s7 = scalar_lea.vmem %s537_s2, %s543_s15  ;;  %s383_s8 = sshll.u32 %s543_s15, 3 }
  0x22   : > { %v384_v9 = vld [vmem:[%s231_s7] ss:$0 sm:$0xff]  ;;  %s235_s11 = scalar_lea.vmem %s538_s3, %s383_s8 }
  0x23   : > { %398 = vmatmul.mubr.msk.bf16.vlgmr.msra.gmra.mrb[0].mxu0 %vm262_vm1, %v238_v8 }
  0xf6   : > { %v300_v10 = vpop.f32.mrb[0].mxu0 }
  0xf7   : > { %v301_v11 = vadd.f32 %v384_v9, %v300_v10  ;;  %v399_v12 = vpop.f32.mrb[1].mxu0 }
  0xf8   : > { %v303_v13 = vpop.f32.mrb[2].mxu0 }
  0xf9   : > { %306 = vst [vmem:[%s235_s11] sm:$0xff] %v301_v11  ;;  %v400_v14 = vpop.f32.mrb[3].mxu0 }
  0xfa PF: > { %p10_p9 = scmp.ge.s32.totalorder %s492_s16, 4   ;;  %s539_s12 = smov %s447_s13 }
  0xfb   : > { %s540_s13 = smov %s501_s19  ;;  %s541_s14 = smov %s492_s16 }
  0xfc   :  { %12 = sbr.rel (!%p10_p9) target bundleno = 2 (0x2), region = 111 }

// kernel: attention_decoder_forward.2
= control target key start
LH: loop header
LB: loop body
LE: loop exit
PB: predicated region body
PF: predicated region fallthrough
CT: control target
= control target key end

     0   :  { %v969_v0 = vmov 0.0   ;;  %vm970_vm0 = vmmov 0   ;;  %vm131_vm1 = vcmask 1043456   ;;  %v971_v4 = vmov 0   ;;  %s972_s17 = smov 96   ;;  %s973_s20 = smov 32   ;;  %s1234_s5 = inlined_call_operand.vmem [shape: bf16[32,8], index: 5, kind: input, shape index: {}]   ;;  %s1235_s4 = inlined_call_operand.vmem [shape: bf16[24,8], index: 4, kind: input, shape index: {}]   ;;  %s1236_s3 = inlined_call_operand.vmem [shape: f32[2,8,32], index: 3, kind: input, shape index: {}, may-alias: {3,14}]   ;;  %s1237_s0 = inlined_call_operand.vmem [shape: f32[8,24], index: 0, kind: input, shape index: {}]   ;;  %s1238_s2 = inlined_call_operand.vmem [shape: s32[8,1], index: 2, kind: input, shape index: {}]   ;;  %s1239_s6 = inlined_call_operand.vmem [shape: f32[1,8], index: 6, kind: input, shape index: {}]   ;;  %s1240_s1 = inlined_call_operand.vmem [shape: bf16[8,256], index: 1, kind: input, shape index: {}]   ;;  %s1241_s7 = inlined_call_operand.vmem [shape: bf16[24,32], index: 7, kind: input, shape index: {}]   ;;  %s1242_s8 = inlined_call_operand.vmem [shape: bf16[32,32], index: 8, kind: input, shape index: {}]   ;;  %s1243_s12 = inlined_call_operand.vmem [shape: bf16[2,32,96], index: 12, kind: input, shape index: {}]   ;;  %s1244_s10 = inlined_call_operand.vmem [shape: bf16[2,32,96], index: 10, kind: input, shape index: {}]   ;;  %s1245_s13 = inlined_call_operand.vmem [shape: f32[2,1,96], index: 13, kind: input, shape index: {}]   ;;  %s1246_s9 = inlined_call_operand.vmem [shape: f32[1,32], index: 9, kind: input, shape index: {}]   ;;  %s1247_s11 = inlined_call_operand.vmem [shape: f32[2,1,96], index: 11, kind: input, shape index: {}]   ;;  %s1248_s14 = inlined_call_operand.vmem [shape: f32[2,8,32], index: 14, kind: output, shape index: {0}, may-alias: {3,14}]   ;;  %s1249_s15 = inlined_call_operand.vmem [shape: f32[8,32], index: 15, kind: output, shape index: {1}]  }
   0x1   :  { %864 = vmatprep.subr.bf16.mxu0 %v969_v0  ;;  %872 = vmatprep.subr.bf16.mxu1 %v969_v0  ;;  %v935_v1 = vld [vmem:[%s1234_s5] sm:$0xff]   ;;  %v937_v3 = vld [vmem:[%s1234_s5 + $0x8] sm:$0xff]   ;;  %vm74_vm2 = vcmask 261120   ;;  %vm127_vm3 = vcmask 195584   ;;  %v183_v12 = vlaneseq  ;;  %vm191_vm5 = vcmask 64512   ;;  %s974_s23 = smov 64  }
   0x2   :  { %v936_v2 = vld [vmem:[%s1235_s4] sm:$0xff]   ;;  %868 = vmatprep.mubr.msk.bf16.mxu0 %vm970_vm0, %v969_v0  ;;  %876 = vmatprep.mubr.msk.bf16.mxu1 %vm970_vm0, %v969_v0  ;;  %v938_v5 = vld [vmem:[%s1235_s4 + $0x8] ss:$0 sps:$4 sm:$0xff]  }
   0x3   :  { %865 = vmatpush3.bf16.msra.mxu0 %v935_v1  ;;  %934 = vset.pattern.permute.xlu0 %v971_v4  ;;  %v1077_v6 = vld [vmem:[%s1236_s3 + $0x8] sm:$0xff]  ;;  %v50_v7 = vld [vmem:[%s1237_s0] sm:$0xff]  ;;  %v133_v9 = vsel %vm131_vm1, %v938_v5, 0  ;;  %v184_v13 = vand.u32 127, %v183_v12  ;;  %v261_v41 = vshrl.u32 %v183_v12, 7 }
   0x4   :  { %873 = vmatpush3.bf16.msra.mxu1 %v936_v2  ;;  %866 = vmatprep.subr.bf16.mxu0 %v969_v0  ;;  %v185_v8 = vld [vmem:[%s1238_s2] sm:$0xff]  ;;  %v1089_v10 = vpack.c.bf16 %v1077_v6, %v1077_v6  ;;  %v1091_v11 = vpack.c.bf16 %v50_v7, %v50_v7  ;;  %v943_v56 = vld [vmem:[%s1241_s7 + $0x8] ss:$0 sps:$4 sm:$0xff]  }
   0x5   :  { %874 = vmatprep.subr.bf16.mxu1 %v969_v0  ;;  %187 = vperm.xlu0 %934, %v185_v8   ;;  %v798_v17 = vld [vmem:[%s1239_s6] ss:$0 sm:$0xff]  ;;  %vm265_vm6 = vcmp.eq.s32.totalorder %v261_v41, 1  ;;  %vm272_vm7 = vcmp.eq.s32.totalorder %v261_v41, 2  ;;  %vm279_vm8 = vcmp.eq.s32.totalorder %v261_v41, 3  ;;  %vm303_vm9 = vcmp.eq.s32.totalorder %v261_v41, 7 }
   0x6   :  { %v204_v33 = vld [vmem:[%s1240_s1] sm:$0xff]  ;;  %vm289_vm10 = vcmp.eq.s32.totalorder %v261_v41, 5  ;;  %vm296_vm11 = vcmp.eq.s32.totalorder %v261_v41, 6  ;;  %vm262_vm12 = vcmp.eq.s32.totalorder %v261_v41, 0  ;;  %vm286_vm13 = vcmp.eq.s32.totalorder %v261_v41, 4  ;;  %v944_v58 = vld [vmem:[%s1242_s8 + $0x8] sm:$0xff]  }
   0x7   :  { %867 = vmatpush3.bf16.msra.mxu0 %v937_v3  ;;  %v800_v34 = vcombine.high %v204_v33, %v204_v33  ;;  %v799_v35 = vcombine.low %v204_v33, %v204_v33  ;;  %v941_v42 = vld [vmem:[%s1241_s7] sm:$0xff]   ;;  %v383_v57 = vsel %vm131_vm1, %v943_v56, 0  ;;  %v946_v61 = vld [vmem:[%s1243_s12 + $0x8] sm:$0xff]   ;;  %v952_v56 = vld [vmem:[%s1244_s10 + $0x18] sm:$0xff]  }
   0x8   :  { %875 = vmatpush3.bf16.msra.mxu1 %v133_v9  ;;  %v942_v54 = vld [vmem:[%s1242_s8] sm:$0xff]  }
   0x9   :  { %880 = vmatprep.subr.bf16.mxu1 %v969_v0  ;;  %801 = vmatprep.subr.msk.bf16.mxu0 %vm131_vm1, %v800_v34  ;;  %v214_v36 = vsel %vm131_vm1, %v799_v35, 0  ;;  %v1146_v59 = vld [vmem:[%s1236_s3] sm:$0xff] }
   0xa   :  { %869 = vmatmul.mubr.msk.bf16.vlgmr.msra.gmra.mrb[0].mxu0 %vm74_vm2, %v1089_v10  ;;  %v945_v60 = vld [vmem:[%s1243_s12] sm:$0xff]   ;;  %v502_v62 = vpack.c.bf16 %v1146_v59, %v1146_v59 }
   0xb   :  { %877 = vmatmul.mubr.msk.bf16.vlgmr.msra.gmra.mrb[0].mxu1 %vm127_vm3, %v1091_v11  ;;  %251 = vmatprep.mubr.bf16.mxu0 %v971_v4 }
   0xc   :  { %884 = vmatprep.mubr.msk.bf16.mxu1 %vm970_vm0, %v969_v0  ;;  %220 = vmatpush1.bf16.msra.mxu0 %v214_v36 }
   0xd   :  { %888 = vmatprep.subr.bf16.mxu0 %v969_v0  ;;  %881 = vmatpush3.bf16.msra.mxu1 %v942_v54 }
   0xe   :  { %882 = vmatprep.subr.bf16.mxu1 %v969_v0 }
  0x11   :  { %883 = vmatpush3.bf16.msra.mxu1 %v944_v58 }
  0x12   :  { %896 = vmatprep.subr.bf16.mxu1 %v969_v0 }
  0x84   :  { %v188_v15 = vpop.permute.xlu0 %187 }
  0x85   :  { %vm189_vm4 = vcmp.lt.s32.totalorder %v184_v13, %v188_v15 }
  0xdd   :  { %v112_v14 = vpop.f32.mrb[0].mxu0 }
  0xde   :  { %v169_v16 = vpop.f32.mrb[0].mxu1  ;;  %v870_v18 = vpop.f32.mrb[1].mxu0 }
  0xdf   :  { %v170_v19 = vadd.f32 %v169_v16, %v112_v14  ;;  %v878_v20 = vpop.f32.mrb[1].mxu1  ;;  %v115_v21 = vpop.f32.mrb[2].mxu0  ;;  %v947_v18 = vld [vmem:[%s1244_s10] sm:$0xff]  }
  0xe0   :  { %v172_v22 = vpop.f32.mrb[2].mxu1  ;;  %v871_v23 = vpop.f32.mrb[3].mxu0  ;;  %v948_v21 = vld [vmem:[%s1244_s10 + $0x8] sm:$0xff]  }
  0xe1   :  { %v182_v24 = vadd.f32 %v798_v17, %v170_v19  ;;  %v879_v25 = vpop.f32.mrb[3].mxu1  ;;  %v814_v22 = vld [vmem:[%s1245_s13] ss:$0 sm:$0xff] }
  0xe3   :  { %v190_v26 = vsel %vm189_vm4, %v182_v24, -1e+30 }
  0xe4   :  { %v192_v27 = vsel %vm191_vm5, %v190_v26, -inf }
  0xe5   :  { %193 = vmax.xlane.f32.xlu0 %v192_v27 }
 0x172   :  { %v194_v28 = vpop.xlane.xlu0 %193 }
 0x173   :  { %v195_v29 = vsub.f32 %v190_v26, %v194_v28 }
 0x175   :  { %v196_v30 = vmul.f32 1.442695, %v195_v29  ;;  %v809_v29 = vld [vmem:[%s1246_s9] ss:$0 sm:$0xff] }
 0x177   :  { %953 = vpow2.f32 %v196_v30 }
 0x181   :  { %v954_v31 = vpop.eup %953 }
 0x182   :  { %v198_v32 = vsel %vm191_vm5, %v954_v31, 0.0 }
 0x183   :  { %199 = vadd.xlane.f32.xlu1 %v198_v32 }
 0x210   :  { %v200_v37 = vpop.xlane.xlu1 %199 }
 0x211   :  { %955 = vrcp.f32 %v200_v37  ;;  %v810_v37 = vld [vmem:[%s1247_s11] ss:$0 sm:$0xff] }
 0x21b   :  { %v956_v38 = vpop.eup %955 }
 0x21c   :  { %v202_v39 = vmul.f32 %v956_v38, %v954_v31 }
 0x21e   :  { %v203_v40 = vpack.c.bf16 %v202_v39, %v202_v39 }
 0x220   :  { %802 = vmatmul.mubr.msk.bf16.vlgmr.msra.gmra.mrb[4].mxu0 %vm191_vm5, %v203_v40 }
 0x221   :  { %892 = vmatprep.mubr.msk.bf16.mxu0 %vm970_vm0, %v969_v0  ;;  %889 = vmatpush3.bf16.msra.mxu0 %v941_v42 }
 0x222   :  { %890 = vmatprep.subr.bf16.mxu0 %v969_v0 }
 0x225   :  { %891 = vmatpush3.bf16.msra.mxu0 %v383_v57 }
 0x226   :  { %904 = vmatprep.subr.bf16.mxu0 %v969_v0 }
 0x228   :  { %893 = vmatmul.mubr.msk.bf16.vlgmr.msra.gmra.mrb[8].mxu0 %vm127_vm3, %v1091_v11 }
 0x229   :  { %908 = vmatprep.mubr.msk.bf16.mxu0 %vm970_vm0, %v969_v0  ;;  %905 = vmatpush3.bf16.msra.mxu0 %v945_v60 }
 0x22a   :  { %906 = vmatprep.subr.bf16.mxu0 %v969_v0 }
 0x22d   :  { %907 = vmatpush3.bf16.msra.mxu0 %v946_v61 }
 0x22e   :  { %920 = vmatprep.subr.bf16.mxu0 %v969_v0 }
 0x230   :  { %909 = vmatmul.mubr.msk.bf16.vlgmr.msra.gmra.mrb[12].mxu0 %vm74_vm2, %v502_v62 }
 0x231   :  { %924 = vmatprep.mubr.msk.bf16.mxu0 %vm970_vm0, %v969_v0 }
 0x2f3   :  { %v253_v43 = vpop.f32.mrb[4].mxu0 }
 0x2f4   :  { %v255_v44 = vpop.f32.mrb[5].mxu0  ;;  %v266_v45 = vsel %vm265_vm6, %v253_v43, 0.0  ;;  %v273_v46 = vsel %vm272_vm7, %v253_v43, 0.0  ;;  %v280_v47 = vsel %vm279_vm8, %v253_v43, 0.0  ;;  %v263_v48 = vsel %vm262_vm12, %v253_v43, 0.0 }
 0x2f5   :  { %268 = vrot.lane.b32.xlu1 %v266_v45, %s972_s17  ;;  %v257_v49 = vpop.f32.mrb[6].mxu0  ;;  %v304_v50 = vsel %vm303_vm9, %v255_v44, 0.0  ;;  %v290_v51 = vsel %vm289_vm10, %v255_v44, 0.0  ;;  %v297_v52 = vsel %vm296_vm11, %v255_v44, 0.0  ;;  %v287_v53 = vsel %vm286_vm13, %v255_v44, 0.0 }
 0x2f6   :  { %306 = vrot.lane.b32.xlu0 %v304_v50, %s973_s20  ;;  %v258_v55 = vpop.f32.mrb[7].mxu0 }
 0x2f7   :  { %v950_v55 = vld [vmem:[%s1243_s12 + $0x18] sm:$0xff]  }
 0x2f9   :  { %275 = vrot.lane.b32.xlu1 %v273_v46, %s974_s23 }
 0x2fb   :  { %v419_v16 = vpop.f32.mrb[8].mxu0 }
 0x2fc   :  { %v894_v17 = vpop.f32.mrb[9].mxu0 }
 0x2fd   :  { %282 = vrot.lane.b32.xlu1 %v280_v47, %s973_s20  ;;  %v422_v19 = vpop.f32.mrb[10].mxu0 }
 0x2fe   :  { %v895_v20 = vpop.f32.mrb[11].mxu0 }
 0x301   :  { %292 = vrot.lane.b32.xlu1 %v290_v51, %s972_s17 }
 0x303   :  { %v563_v23 = vpop.f32.mrb[12].mxu0 }
 0x304   :  { %v564_v24 = vadd.f32 %v814_v22, %v563_v23  ;;  %v910_v25 = vpop.f32.mrb[13].mxu0 }
 0x305   :  { %299 = vrot.lane.b32.xlu1 %v297_v52, %s974_s23  ;;  %v566_v26 = vpop.f32.mrb[14].mxu0  ;;  %v949_v52 = vld [vmem:[%s1243_s12 + $0x10] sm:$0xff]  }
 0x306   :  { %v911_v27 = vpop.f32.mrb[15].mxu0  ;;  %921 = vmatpush3.bf16.msra.mxu0 %v949_v52 }
 0x307   :  { %922 = vmatprep.subr.bf16.mxu0 %v969_v0 }
 0x309   :  { %577 = vrot.lane.b32.xlu1 %v564_v24, %s974_s23 }
 0x30a   :  { %923 = vmatpush3.bf16.msra.mxu0 %v950_v55 }
 0x30d   :  { %925 = vmatmul.mubr.msk.bf16.vlgmr.msra.gmra.mrb[16].mxu0 %vm74_vm2, %v1089_v10 }
 0x367   :  { %v269_v63 = vpop.permute.xlu1 %268 }
 0x368   :  { %v271_v2 = vadd.f32 %v269_v63, %v263_v48  ;;  %v307_v13 = vpop.permute.xlu0 %306 }
 0x36b   :  { %v276_v1 = vpop.permute.xlu1 %275 }
 0x36c   :  { %v278_v3 = vadd.f32 %v276_v1, %v271_v2 }
 0x36f   :  { %v283_v4 = vpop.permute.xlu1 %282 }
 0x370   :  { %v285_v5 = vadd.f32 %v283_v4, %v278_v3 }
 0x372   :  { %v288_v7 = vadd.f32 %v287_v53, %v285_v5  ;;  %v951_v53 = vld [vmem:[%s1244_s10 + $0x10] sm:$0xff]  }
 0x373   :  { %v293_v8 = vpop.permute.xlu1 %292 }
 0x374   :  { %v295_v9 = vadd.f32 %v293_v8, %v288_v7  ;;  %v825_v7 = vld [vmem:[%s1247_s11 + $0x1] ss:$0 sm:$0xff] }
 0x377   :  { %v300_v11 = vpop.permute.xlu1 %299 }
 0x378   :  { %v302_v12 = vadd.f32 %v300_v11, %v295_v9 }
 0x37a   :  { %v309_v14 = vadd.f32 %v307_v13, %v302_v12 }
 0x37b   :  { %v578_v47 = vpop.permute.xlu1 %577 }
 0x37c   :  { %v313_v15 = vpack.c.bf16 %v309_v14, %v309_v14 }
 0x37e   :  { %885 = vmatmul.mubr.msk.bf16.vlgmr.msra.gmra.mrb[4].mxu1 %vm74_vm2, %v313_v15 }
 0x37f   :  { %900 = vmatprep.mubr.msk.bf16.mxu1 %vm970_vm0, %v969_v0  ;;  %897 = vmatpush3.bf16.msra.mxu1 %v947_v18 }
 0x380   :  { %898 = vmatprep.subr.bf16.mxu1 %v969_v0 }
 0x383   :  { %899 = vmatpush3.bf16.msra.mxu1 %v948_v21 }
 0x384   :  { %912 = vmatprep.subr.bf16.mxu1 %v969_v0 }
 0x3e0   :  { %v740_v2 = vpop.f32.mrb[16].mxu0 }
 0x3e1   :  { %v926_v4 = vpop.f32.mrb[17].mxu0 }
 0x451   :  { %v367_v28 = vpop.f32.mrb[4].mxu1 }
 0x452   :  { %v420_v30 = vadd.f32 %v419_v16, %v367_v28  ;;  %v886_v31 = vpop.f32.mrb[5].mxu1 }
 0x453   :  { %v370_v32 = vpop.f32.mrb[6].mxu1 }
 0x454   :  { %v432_v33 = vadd.f32 %v809_v29, %v420_v30  ;;  %v887_v34 = vpop.f32.mrb[7].mxu1 }
 0x456   :  { %v433_v35 = vmax.f32 %v432_v33, 0.0 }
 0x458   :  { %v435_v36 = vpack.c.bf16 %v433_v35, %v433_v35 }
 0x45a   :  { %901 = vmatmul.mubr.msk.bf16.vlgmr.msra.gmra.mrb[8].mxu1 %vm74_vm2, %v435_v36 }
 0x45b   :  { %916 = vmatprep.mubr.msk.bf16.mxu1 %vm970_vm0, %v969_v0  ;;  %913 = vmatpush3.bf16.msra.mxu1 %v951_v53 }
 0x45c   :  { %914 = vmatprep.subr.bf16.mxu1 %v969_v0  ;;  %v834_v0 = vld [vmem:[%s1245_s13 + $0x1] ss:$0 sm:$0xff] }
 0x45d   :  { %v741_v3 = vadd.f32 %v834_v0, %v740_v2 }
 0x45f   :  { %915 = vmatpush3.bf16.msra.mxu1 %v952_v56  ;;  %754 = vrot.lane.b32.xlu0 %v741_v3, %s974_s23 }
 0x4d1   :  { %v755_v18 = vpop.permute.xlu0 %754 }
 0x52d   :  { %v496_v38 = vpop.f32.mrb[8].mxu1 }
 0x52e   :  { %v497_v39 = vadd.f32 %v810_v37, %v496_v38  ;;  %v902_v40 = vpop.f32.mrb[9].mxu1 }
 0x52f   :  { %v499_v41 = vpop.f32.mrb[10].mxu1 }
 0x530   :  { %v569_v42 = vadd.f32 %v564_v24, %v497_v39  ;;  %v903_v43 = vpop.f32.mrb[11].mxu1 }
 0x532   :  { %v818_v44 = vmul.f32 -1.442695, %v569_v42 }
 0x534   :  { %957 = vpow2.f32 %v818_v44 }
 0x53e   :  { %v958_v45 = vpop.eup %957 }
 0x53f   :  { %v573_v46 = vadd.f32 1.0, %v958_v45 }
 0x541   :  { %959 = vrcp.f32 %v573_v46 }
 0x54b   :  { %v960_v48 = vpop.eup %959 }
 0x54c   :  { %v580_v49 = vmul.f32 %v960_v48, %v578_v47  ;;  %v587_v58 = vsub.f32 1.0, %v960_v48 }
 0x54e   :  { %582 = vrot.lane.b32.xlu1 %v580_v49, %s974_s23 }
 0x5c0   :  { %v583_v50 = vpop.permute.xlu1 %582 }
 0x5c1   :  { %v585_v51 = vadd.f32 %v583_v50, %v497_v39 }
 0x5c3   :  { %961 = vtanh.f32 %v585_v51 }
 0x5cd   :  { %v962_v54 = vpop.eup %961 }
 0x5ce   :  { %589 = vrot.lane.b32.xlu1 %v962_v54, %s972_s17 }
 0x5d2   :  { %594 = vrot.lane.b32.xlu1 %v1146_v59, %s973_s20  ;;  %v743_v59 = vpop.f32.mrb[18].mxu0 }
 0x5d3   :  { %v927_v5 = vpop.f32.mrb[19].mxu0 }
 0x640   :  { %v590_v57 = vpop.permute.xlu1 %589 }
 0x641   :  { %v592_v61 = vmul.f32 %v590_v57, %v587_v58 }
 0x644   :  { %v595_v60 = vpop.permute.xlu1 %594 }
 0x645   :  { %v597_v62 = vmul.f32 %v960_v48, %v595_v60 }
 0x647   :  { %v598_v63 = vadd.f32 %v597_v62, %v592_v61 }
 0x649   :  { %v605_v1 = vpack.c.bf16 %v598_v63, %v598_v63 }
 0x64b   :  { %620 = vrot.lane.b32.xlu1 %v605_v1, %s972_s17 }
 0x6bd   :  { %v621_v10 = vpop.permute.xlu1 %620 }
 0x6be   :  { %917 = vmatmul.mubr.msk.bf16.vlgmr.msra.gmra.mrb[12].mxu1 %vm74_vm2, %v621_v10 }
 0x791   :  { %v671_v8 = vpop.f32.mrb[12].mxu1 }
 0x792   :  { %v672_v9 = vadd.f32 %v825_v7, %v671_v8  ;;  %v918_v11 = vpop.f32.mrb[13].mxu1 }
 0x793   :  { %v674_v12 = vpop.f32.mrb[14].mxu1 }
 0x794   :  { %v746_v13 = vadd.f32 %v741_v3, %v672_v9  ;;  %v919_v14 = vpop.f32.mrb[15].mxu1 }
 0x796   :  { %v838_v15 = vmul.f32 -1.442695, %v746_v13 }
 0x798   :  { %963 = vpow2.f32 %v838_v15 }
 0x7a2   :  { %v964_v16 = vpop.eup %963 }
 0x7a3   :  { %v750_v17 = vadd.f32 1.0, %v964_v16 }
 0x7a5   :  { %965 = vrcp.f32 %v750_v17 }
 0x7af   :  { %v966_v19 = vpop.eup %965 }
 0x7b0   :  { %v757_v20 = vmul.f32 %v966_v19, %v755_v18  ;;  %v764_v25 = vsub.f32 1.0, %v966_v19 }
 0x7b2   :  { %759 = vrot.lane.b32.xlu1 %v757_v20, %s974_s23 }
 0x7b6   :  { %771 = vrot.lane.b32.xlu1 %v1077_v6, %s973_s20 }
 0x824   :  { %v760_v21 = vpop.permute.xlu1 %759 }
 0x825   :  { %v762_v22 = vadd.f32 %v760_v21, %v672_v9 }
 0x827   :  { %967 = vtanh.f32 %v762_v22 }
 0x828   :  { %v772_v24 = vpop.permute.xlu1 %771 }
 0x829   :  { %v774_v27 = vmul.f32 %v966_v19, %v772_v24 }
 0x831   :  { %v968_v23 = vpop.eup %967 }
 0x832   :  { %766 = vrot.lane.b32.xlu0 %v968_v23, %s972_s17 }
 0x836   :  { %600 = vrot.lane.b32.xlu0 %v598_v63, %s972_s17 }
 0x8a4   :  { %v767_v26 = vpop.permute.xlu0 %766 }
 0x8a5   :  { %v769_v28 = vmul.f32 %v767_v26, %v764_v25 }
 0x8a7   :  { %v775_v29 = vadd.f32 %v774_v27, %v769_v28 }
 0x8a8   :  { %v601_v30 = vpop.permute.xlu0 %600 }
 0x8a9   :  { %603 = vst.msk [vmem:[%s1248_s14] sm:$0xff] %vm74_vm2, %v601_v30  ;;  %777 = vrot.lane.b32.xlu1 %v775_v29, %s972_s17 }
 0x91b   :  { %v778_v6 = vpop.permute.xlu1 %777 }
 0x91c   :  { %839 = vst.msk [vmem:[%s1248_s14 + $0x8] sm:$0xff] %vm74_vm2, %v778_v6  ;;  %782 = vst.msk [vmem:[%s1249_s15] sm:$0xff] %vm74_vm2, %v778_v6 }

</bundles_post_ra>
